<compile_context>
chip_gen: v6e
topology: v6e:2x2x1
jax: 0.10.0
libtpu: 0.0.40
codegen_flags: <defaults>
</compile_context>

<pallas_src>
import functools

import jax
import jax.numpy as jnp
from jax.experimental import pallas as pl
from jax.experimental.pallas import tpu as pltpu


_ROLL_SIGN = None


def _roll_sign():
    """Probe pltpu.roll once: +1 if it matches jnp.roll, -1 if opposite
    direction, 0 if unusable (then we fall back to the concat path)."""
    global _ROLL_SIGN
    if _ROLL_SIGN is not None:
        return _ROLL_SIGN
    try:
        def kern(x_ref, o_ref):
            o_ref[...] = pltpu.roll(x_ref[...], shift=1, axis=1)

        x = jnp.tile(jax.lax.iota(jnp.float32, 128)[None, :], (8, 1))
        y = pl.pallas_call(
            kern, out_shape=jax.ShapeDtypeStruct((8, 128), jnp.float32))(x)
        y = jax.block_until_ready(y)
        if bool(jnp.array_equal(y, jnp.roll(x, 1, axis=1))):
            _ROLL_SIGN = 1
        elif bool(jnp.array_equal(y, jnp.roll(x, -1, axis=1))):
            _ROLL_SIGN = -1
        else:
            _ROLL_SIGN = 0
    except Exception:
        _ROLL_SIGN = 0
    return _ROLL_SIGN


def _dwsep_kernel(x_ref, halo_ref, wdw_ref, wpw_ref, beff_ref, o_ref,
                  *, k, bn, use_roll, roll_sign):
    """One (batch-block, L-tile) grid step.

    x_ref   : (bn, Cin, TL)             input tile (NCL layout, L on lanes)
    halo_ref: (nTiles, bn, Cin, 2*pad)  halo columns, resident per batch-block
    wdw_ref : (Cin, k)                  depthwise weights (channel, tap)
    wpw_ref : (Cout, Cin)               pointwise weights
    beff_ref: (Cout, 1) float32         folded bias  b_pw + W_pw @ b_dw
    o_ref   : (bn, Cout, TL)            output tile
    """
    pad = k // 2
    tl = o_ref.shape[2]
    lt = pl.program_id(1)

    wdw = wdw_ref[...].astype(jnp.float32)            # (Cin, k)
    wpw = wpw_ref[...].astype(jnp.float32)            # (Cout, Cin)
    beff = beff_ref[...]                               # (Cout, 1) f32

    if pad > 0:
        halos = halo_ref[lt]                           # (bn, Cin, 2*pad)

    for b in range(bn):
        xv = x_ref[b]                                  # (Cin, TL), input dtype

        if use_roll:
            # k-tap FIR via XLU lane rotations: no halo-extended copy of the
            # tile is materialised.  Only the pad leftmost / pad rightmost
            # columns are wrong (wrapped) and are overwritten below.
            acc = xv.astype(jnp.float32) * wdw[:, pad:pad + 1]
            for t in range(k):
                if t == pad:
                    continue
                shift = ((pad - t) * roll_sign) % tl
                xs = pltpu.roll(xv, shift=shift, axis=1)
                acc = acc + xs.astype(jnp.float32) * wdw[:, t:t + 1]
        else:
            # Small-tile fallback: assemble [L | x | R] once as a value.
            if pad > 0:
                halo = halos[b]
                xe = jnp.concatenate([halo[:, :pad], xv, halo[:, pad:]], axis=1)
            else:
                xe = xv
            acc = xe[:, 0:tl].astype(jnp.float32) * wdw[:, 0:1]
            for t in range(1, k):
                acc = acc + xe[:, t:t + tl].astype(jnp.float32) * wdw[:, t:t + 1]

        # ---- pointwise 1x1 conv: always on the MXU (otherwise idle here) ----
        y = jnp.dot(wpw, acc, preferred_element_type=jnp.float32) + beff
        o_ref[b] = y.astype(o_ref.dtype)

        if use_roll and pad > 0:
            # Exact recomputation of the 2*pad edge output columns from a tiny
            # (Cin, 3*pad) edge slab; overwrites the wrapped columns above.
            halo = halos[b]
            edge_l = jnp.concatenate(
                [halo[:, :pad], xv[:, :2 * pad]], axis=1).astype(jnp.float32)
            edge_r = jnp.concatenate(
                [xv[:, tl - 2 * pad:], halo[:, pad:]], axis=1).astype(jnp.float32)
            fix_l = edge_l[:, 0:pad] * wdw[:, 0:1]
            fix_r = edge_r[:, 0:pad] * wdw[:, 0:1]
            for t in range(1, k):
                fix_l = fix_l + edge_l[:, t:t + pad] * wdw[:, t:t + 1]
                fix_r = fix_r + edge_r[:, t:t + pad] * wdw[:, t:t + 1]
            fix = jnp.concatenate([fix_l, fix_r], axis=1)       # (Cin, 2*pad)
            ye = jnp.dot(wpw, fix, preferred_element_type=jnp.float32) + beff
            o_ref[b, :, 0:pad] = ye[:, 0:pad].astype(o_ref.dtype)
            o_ref[b, :, tl - pad:tl] = ye[:, pad:2 * pad].astype(o_ref.dtype)


def _choose_tile_l(cin, cout, length, itemsize):
    """Largest lane tile (multiple of 128, or full L when L is small) keeping a
    single (channels, TL) f32 slab <= ~4 MiB (safe for v7x's 64 MiB VMEM)."""
    row_ch = max(cin, cout, 8)
    cap = (4 * 1024 * 1024) // (row_ch * 4)
    cap = max(128, (cap // 128) * 128)
    max_tl = min(8192, cap)
    if length <= max_tl:
        return length
    t = max_tl
    while t >= 128:
        if length % t == 0:
            return t
        t -= 128
    return 128


def _choose_batch_block(n, cin, tile_l, num_tiles, itemsize):
    """Fold batch into the block while x blocks are small (<512 KiB), keeping
    at least 2 parallel grid steps (v7x megacore) and a bounded unroll."""
    bn = 1
    while (bn < 8 and n % (2 * bn) == 0
           and bn * cin * tile_l * itemsize < 512 * 1024
           and (n // (2 * bn)) * num_tiles >= 2):
        bn *= 2
    return bn


def depthwise_separable_conv1d(x, w_dw_pt, b_dw, w_pw_pt, b_pw, *,
                               k, tile_l=None, batch_block=None):
    """x: (N, Cin, L) - PyTorch NCL layout.

    w_dw_pt: (Cin, 1, k)   depthwise Conv1d weight (PyTorch layout)
    b_dw   : (Cin,)        depthwise bias
    w_pw_pt: (Cout, Cin, 1) pointwise Conv1d weight (PyTorch layout)
    b_pw   : (Cout,)       pointwise bias
    Returns (N, Cout, L).
    """
    n, cin, length = x.shape
    cout = w_pw_pt.shape[0]
    assert w_dw_pt.shape == (cin, 1, k)
    assert k % 2 == 1, "padding=k//2 matches PyTorch 'same' length only for odd k"
    pad = k // 2
    itemsize = jnp.dtype(x.dtype).itemsize

    # Ragged L: zero-extend to a multiple of 128 (identical to 'same' zero
    # padding; result sliced back).  Keeps output blocks lane dense.
    orig_length = length
    if length > 128 and length % 128 != 0:
        new_len = ((length + 127) // 128) * 128
        x = jnp.pad(x, ((0, 0), (0, 0), (0, new_len - length)))
        length = new_len

    if tile_l is None:
        tile_l = _choose_tile_l(cin, cout, length, itemsize)
    assert length % tile_l == 0, "tile_l must divide (padded) L"
    num_tiles = length // tile_l
    if batch_block is None:
        batch_block = _choose_batch_block(n, cin, tile_l, num_tiles, itemsize)
    bn = batch_block
    assert n % bn == 0, "batch_block must divide N"

    # Weight re-layout + bias folding (tiny, host-side).  b_eff stays float32.
    w_dw = w_dw_pt[:, 0, :]                                    # (Cin, k)
    w_pw = w_pw_pt[:, :, 0]                                    # (Cout, Cin)
    b_eff = (b_pw.astype(jnp.float32)
             + w_pw.astype(jnp.float32) @ b_dw.astype(jnp.float32))
    b_eff = b_eff.reshape(cout, 1)

    # Per-tile halo columns (nTiles, N, Cin, 2*pad) = [left | right]; reads only
    # ~2*pad/tile_l of x's bytes.  Global edges are zero ('same' padding).
    hw = max(2 * pad, 2)
    if pad > 0:
        x_t = x.reshape(n, cin, num_tiles, tile_l)
        z = jnp.zeros((n, cin, 1, pad), x.dtype)
        left = jnp.concatenate([z, x_t[:, :, :-1, tile_l - pad:]], axis=2)
        right = jnp.concatenate([x_t[:, :, 1:, :pad], z], axis=2)
        halo = jnp.concatenate([left, right], axis=3)          # (N, Cin, nT, 2p)
        halo = jnp.transpose(halo, (2, 0, 1, 3))               # (nT, N, Cin, 2p)
    else:
        halo = jnp.zeros((num_tiles, n, cin, hw), x.dtype)

    roll_sign = _roll_sign() if (pad > 0 and tile_l % 128 == 0) else 0
    use_roll = (pad > 0 and tile_l % 128 == 0 and tile_l >= 2 * pad
                and roll_sign != 0)

    kernel = functools.partial(_dwsep_kernel, k=k, bn=bn,
                               use_roll=use_roll, roll_sign=roll_sign)

    # VMEM budget: double-buffered blocks + in-kernel f32 temporaries.
    xb = bn * cin * tile_l * itemsize
    ob = bn * cout * tile_l * itemsize
    hb = num_tiles * bn * cin * hw * itemsize
    wb = (cin * k + cout * cin) * itemsize + cout * 4
    temps = (2 * cin + cout) * tile_l * 4
    est = 2 * (xb + ob + hb + wb) + 2 * temps
    vmem_limit = int(max(32 * 1024 * 1024, min(48 * 1024 * 1024, 2 * est)))

    flops = 2 * n * length * cin * (k + cout)
    bytes_accessed = int((x.size + n * cout * length + halo.size
                          + w_dw.size + w_pw.size) * itemsize + b_eff.size * 4)

    out = pl.pallas_call(
        kernel,
        out_shape=jax.ShapeDtypeStruct((n, cout, length), x.dtype),
        grid_spec=pltpu.PrefetchScalarGridSpec(
            num_scalar_prefetch=0,
            grid=(n // bn, num_tiles),
            in_specs=[
                pl.BlockSpec((bn, cin, tile_l), lambda bi, lt: (bi, 0, lt)),
                pl.BlockSpec((num_tiles, bn, cin, hw),
                             lambda bi, lt: (0, bi, 0, 0)),
                pl.BlockSpec((cin, k), lambda bi, lt: (0, 0)),
                pl.BlockSpec((cout, cin), lambda bi, lt: (0, 0)),
                pl.BlockSpec((cout, 1), lambda bi, lt: (0, 0)),
            ],
            out_specs=pl.BlockSpec((bn, cout, tile_l), lambda bi, lt: (bi, 0, lt)),
        ),
        compiler_params=pltpu.CompilerParams(
            dimension_semantics=("parallel", "parallel"),
            vmem_limit_bytes=vmem_limit),
        cost_estimate=pl.CostEstimate(
            flops=int(flops), transcendentals=0,
            bytes_accessed=int(bytes_accessed)),
    )(x, halo, w_dw, w_pw, b_eff)

    if length != orig_length:
        out = out[:, :, :orig_length]
    return out


def _reference(x, w_dw_pt, b_dw, w_pw_pt, b_pw, *, k):
    """Pure-JAX reference (matches PyTorch Conv1d cross-correlation)."""
    pad = k // 2
    n, cin, length = x.shape
    xp = jnp.pad(x, ((0, 0), (0, 0), (pad, pad)))
    acc = jnp.zeros((n, cin, length), jnp.float32)
    for t in range(k):
        acc = acc + (xp[:, :, t:t + length].astype(jnp.float32)
                     * w_dw_pt[:, 0, t][None, :, None])
    acc = acc + b_dw[None, :, None]
    y = jnp.einsum("oc,ncl->nol", w_pw_pt[:, :, 0].astype(jnp.float32), acc,
                   precision=jax.lax.Precision.HIGHEST)
    return y + b_pw[None, :, None]


if __name__ == "__main__":
    def run_case(n, cin, cout, length, k, tile_l=None, batch_block=None,
                 zero_bias=True, seed=0):
        key = jax.random.PRNGKey(seed)
        kx, kdw, kpw, kb1, kb2 = jax.random.split(key, 5)
        x = jax.random.normal(kx, (n, cin, length), jnp.float32)

        # Deterministic synthetic parameters (init is not forward semantics).
        # kaiming_normal_ on a (Cin, 1, k) depthwise weight -> std = sqrt(2/k).
        w_dw = jax.random.normal(kdw, (cin, 1, k), jnp.float32) * jnp.sqrt(2.0 / k)
        bound = 1.0 / jnp.sqrt(jnp.float32(cin))
        w_pw = jax.random.uniform(kpw, (cout, cin, 1), jnp.float32,
                                  minval=-bound, maxval=bound)
        if zero_bias:   # module init: constant_(bias, 0.0)
            b_dw = jnp.zeros((cin,), jnp.float32)
            b_pw = jnp.zeros((cout,), jnp.float32)
        else:           # exercise the bias-folding path
            b_dw = 0.1 * jax.random.normal(kb1, (cin,), jnp.float32)
            b_pw = 0.1 * jax.random.normal(kb2, (cout,), jnp.float32)

        out = depthwise_separable_conv1d(x, w_dw, b_dw, w_pw, b_pw, k=k,
                                         tile_l=tile_l, batch_block=batch_block)
        out = jax.block_until_ready(out)
        ref = _reference(x, w_dw, b_dw, w_pw, b_pw, k=k)
        assert out.shape == (n, cout, length)
        err = float(jnp.max(jnp.abs(out - ref)))
        assert bool(jnp.allclose(out, ref, atol=1e-4, rtol=1e-4)), f"max err {err}"

    # Tiny shape (single sub-128 tile): concat fallback path + MXU pointwise.
    run_case(2, 4, 8, 16, 3, zero_bias=True, seed=0)
    # Multi-tile roll path: inter-tile halos, batch folding, bias folding.
    run_case(2, 4, 8, 256, 5, tile_l=128, batch_block=2, zero_bias=False, seed=1)
    # Default tile/batch-block selection, larger channel counts.
    run_case(2, 16, 32, 512, 3, zero_bias=False, seed=2)

    print("KERNEL_OK")
</pallas_src>

<mosaic_0001>
module attributes {stable_mosaic.version = 11 : i64} {
  func.func @_dwsep_kernel(%arg0: i32, %arg1: i32, %arg2: memref<1x4x16xf32, #tpu.memory_space<vmem>>, %arg3: memref<1x1x4x2xf32, #tpu.memory_space<vmem>>, %arg4: memref<4x3xf32, #tpu.memory_space<vmem>>, %arg5: memref<8x4xf32, #tpu.memory_space<vmem>>, %arg6: memref<8x1xf32, #tpu.memory_space<vmem>>, %arg7: memref<1x8x16xf32, #tpu.memory_space<vmem>>) attributes {dimension_semantics = [#tpu.dimension_semantics<parallel>, #tpu.dimension_semantics<parallel>], iteration_bounds = array<i64: 2, 1>, scalar_prefetch = 0 : i64, scratch_operands = 0 : i64, tpu.core_type = #tpu.core_type<tc>, window_params = [{transform_indices = @transform_0, window_bounds = array<i64: 1, 4, 16>}, {transform_indices = @transform_1, window_bounds = array<i64: 1, 1, 4, 2>}, {pipeline_mode = #tpu.pipeline_mode<synchronous>, transform_indices = @transform_2, window_bounds = array<i64: 4, 3>}, {pipeline_mode = #tpu.pipeline_mode<synchronous>, transform_indices = @transform_3, window_bounds = array<i64: 8, 4>}, {pipeline_mode = #tpu.pipeline_mode<synchronous>, transform_indices = @transform_4, window_bounds = array<i64: 8, 1>}, {transform_indices = @transform_5, window_bounds = array<i64: 1, 8, 16>}]} {
    %c0 = arith.constant 0 : index
    %c0_0 = arith.constant 0 : index
    %0 = vector.load %arg4[%c0, %c0_0] : memref<4x3xf32, #tpu.memory_space<vmem>>, vector<4x3xf32>
    %c0_1 = arith.constant 0 : index
    %c0_2 = arith.constant 0 : index
    %1 = vector.load %arg5[%c0_1, %c0_2] : memref<8x4xf32, #tpu.memory_space<vmem>>, vector<8x4xf32>
    %c0_3 = arith.constant 0 : index
    %c0_4 = arith.constant 0 : index
    %2 = vector.load %arg6[%c0_3, %c0_4] : memref<8x1xf32, #tpu.memory_space<vmem>>, vector<8x1xf32>
    %3 = arith.index_cast %arg1 : i32 to index
    %c0_5 = arith.constant 0 : index
    %c0_6 = arith.constant 0 : index
    %c0_7 = arith.constant 0 : index
    %4 = vector.load %arg3[%3, %c0_5, %c0_6, %c0_7] : memref<1x1x4x2xf32, #tpu.memory_space<vmem>>, vector<1x1x4x2xf32>
    %5 = vector.shape_cast %4 : vector<1x1x4x2xf32> to vector<1x4x2xf32>
    %c0_8 = arith.constant 0 : index
    %c0_9 = arith.constant 0 : index
    %c0_10 = arith.constant 0 : index
    %6 = vector.load %arg2[%c0_8, %c0_9, %c0_10] : memref<1x4x16xf32, #tpu.memory_space<vmem>>, vector<1x4x16xf32>
    %7 = vector.shape_cast %6 : vector<1x4x16xf32> to vector<4x16xf32>
    %8 = vector.shape_cast %5 : vector<1x4x2xf32> to vector<4x2xf32>
    %9 = vector.extract_strided_slice %8 {offsets = [0, 0], sizes = [4, 1], strides = [1, 1]} : vector<4x2xf32> to vector<4x1xf32>
    %10 = vector.extract_strided_slice %8 {offsets = [0, 1], sizes = [4, 1], strides = [1, 1]} : vector<4x2xf32> to vector<4x1xf32>
    %11 = tpu.concatenate %9, %7, %10 in 1 : vector<4x1xf32>, vector<4x16xf32>, vector<4x1xf32> -> vector<4x18xf32>
    %12 = vector.extract_strided_slice %11 {offsets = [0, 0], sizes = [4, 16], strides = [1, 1]} : vector<4x18xf32> to vector<4x16xf32>
    %13 = vector.extract_strided_slice %0 {offsets = [0, 0], sizes = [4, 1], strides = [1, 1]} : vector<4x3xf32> to vector<4x1xf32>
    %14 = vector.broadcast %13 : vector<4x1xf32> to vector<4x16xf32>
    %15 = arith.mulf %12, %14 : vector<4x16xf32>
    %16 = vector.extract_strided_slice %11 {offsets = [0, 1], sizes = [4, 16], strides = [1, 1]} : vector<4x18xf32> to vector<4x16xf32>
    %17 = vector.extract_strided_slice %0 {offsets = [0, 1], sizes = [4, 1], strides = [1, 1]} : vector<4x3xf32> to vector<4x1xf32>
    %18 = vector.broadcast %17 : vector<4x1xf32> to vector<4x16xf32>
    %19 = arith.mulf %16, %18 : vector<4x16xf32>
    %20 = arith.addf %15, %19 : vector<4x16xf32>
    %21 = vector.extract_strided_slice %11 {offsets = [0, 2], sizes = [4, 16], strides = [1, 1]} : vector<4x18xf32> to vector<4x16xf32>
    %22 = vector.extract_strided_slice %0 {offsets = [0, 2], sizes = [4, 1], strides = [1, 1]} : vector<4x3xf32> to vector<4x1xf32>
    %23 = vector.broadcast %22 : vector<4x1xf32> to vector<4x16xf32>
    %24 = arith.mulf %21, %23 : vector<4x16xf32>
    %25 = arith.addf %20, %24 : vector<4x16xf32>
    %cst = arith.constant dense<0.000000e+00> : vector<8x16xf32>
    %26 = tpu.matmul %1, %25, %cst {dimension_numbers = #tpu.dot_dimension_numbers<[1], [0], [0], [1], [0, 0, 1, 1], [], []>} : vector<8x4xf32>, vector<4x16xf32>, vector<8x16xf32> -> vector<8x16xf32>
    %27 = vector.broadcast %2 : vector<8x1xf32> to vector<8x16xf32>
    %28 = arith.addf %26, %27 : vector<8x16xf32>
    %c0_11 = arith.constant 0 : index
    %c0_12 = arith.constant 0 : index
    %c0_13 = arith.constant 0 : index
    %29 = vector.load %arg7[%c0_11, %c0_12, %c0_13] : memref<1x8x16xf32, #tpu.memory_space<vmem>>, vector<1x8x16xf32>
    %30 = vector.shape_cast %29 : vector<1x8x16xf32> to vector<8x16xf32>
    %31 = vector.shape_cast %28 : vector<8x16xf32> to vector<1x8x16xf32>
    tpu.vector_store %arg7[%c0_11, %c0_12, %c0_13], %31 {strides = array<i32>} : memref<1x8x16xf32, #tpu.memory_space<vmem>>, vector<1x8x16xf32>,
    return
  }
  func.func @transform_0(%arg0: i32, %arg1: i32) -> (i32, i32, i32) {
    %c0_i32 = arith.constant 0 : i32
    %c0_i32_0 = arith.constant 0 : i32
    return %arg0, %c0_i32, %arg1 : i32, i32, i32
  }
  func.func @transform_1(%arg0: i32, %arg1: i32) -> (i32, i32, i32, i32) {
    %c0_i32 = arith.constant 0 : i32
    %c0_i32_0 = arith.constant 0 : i32
    %c0_i32_1 = arith.constant 0 : i32
    %c0_i32_2 = arith.constant 0 : i32
    return %c0_i32, %arg0, %c0_i32_0, %c0_i32_1 : i32, i32, i32, i32
  }
  func.func @transform_2(%arg0: i32, %arg1: i32) -> (i32, i32) {
    %c0_i32 = arith.constant 0 : i32
    %c0_i32_0 = arith.constant 0 : i32
    %c0_i32_1 = arith.constant 0 : i32
    return %c0_i32, %c0_i32_0 : i32, i32
  }
  func.func @transform_3(%arg0: i32, %arg1: i32) -> (i32, i32) {
    %c0_i32 = arith.constant 0 : i32
    %c0_i32_0 = arith.constant 0 : i32
    %c0_i32_1 = arith.constant 0 : i32
    return %c0_i32, %c0_i32_0 : i32, i32
  }
  func.func @transform_4(%arg0: i32, %arg1: i32) -> (i32, i32) {
    %c0_i32 = arith.constant 0 : i32
    %c0_i32_0 = arith.constant 0 : i32
    %c0_i32_1 = arith.constant 0 : i32
    return %c0_i32, %c0_i32_0 : i32, i32
  }
  func.func @transform_5(%arg0: i32, %arg1: i32) -> (i32, i32, i32) {
    %c0_i32 = arith.constant 0 : i32
    %c0_i32_0 = arith.constant 0 : i32
    return %arg0, %c0_i32, %arg1 : i32, i32, i32
  }
}

</mosaic_0001>

<bundles_post_ra>
// kernel: tpu_custom_call.1
= control target key start
LH: loop header
LB: loop body
LE: loop exit
PB: predicated region body
PF: predicated region fallthrough
CT: control target
= control target key end

     0   :  { %10 = vsyncpa [#allocation3], 0  ;;  %s816_s0 = inlined_call_operand.vmem [shape: f32[2,4,16], index: 0, kind: input, shape index: {}]   ;;  %s817_s1 = inlined_call_operand.vmem [shape: f32[1,2,4,2], index: 1, kind: input, shape index: {}]   ;;  %s818_s2 = inlined_call_operand.vmem [shape: f32[4,3], index: 2, kind: input, shape index: {}]   ;;  %s819_s3 = inlined_call_operand.vmem [shape: f32[8,4], index: 3, kind: input, shape index: {}]   ;;  %s820_s4 = inlined_call_operand.vmem [shape: f32[8,1], index: 4, kind: input, shape index: {}]   ;;  %s821_s5 = inlined_call_operand.hbm [shape: f32[2,8,16], index: 5, kind: output, shape index: {}]  }
   0x1   :  { %12 = vsyncpa [#allocation3 + $0x1], 0  ;;  %s699_s18 = smov 0   ;;  %s701_s19 = smov 0  }
   0x2   :  { %s703_s20 = smov 0   ;;  %s705_s21 = smov 0  }
   0x3   :  { %s707_s22 = smov 0   ;;  %s709_s23 = smov 0  }
   0x4 LB: > { %s492_s24 = sadd.s32 4294967295, %s657_s23   ;;  %s493_s25 = sadd.s32 4294967294, %s657_s23   ;;  %s657_s23 = sphi %s709_s23, %s18_s23   ;;  %s653_s22 = sphi %s707_s22, %s828_s22   ;;  %s649_s21 = sphi %s705_s21, %s827_s21   ;;  %s645_s20 = sphi %s703_s20, %s826_s20   ;;  %s641_s19 = sphi %s701_s19, %s825_s19   ;;  %s637_s18 = sphi %s699_s18, %s824_s18  }
   0x5   : > { %s30_s26 = sadd.s32 1, %s653_s22  ;;  %s156_s27 = sadd.s32 1, %s645_s20 }
   0x6   : > { %p32_p0 = scmp.ge.s32.totalorder %s30_s26, 2  ;;  %p166_p1 = scmp.ne.s32.totalorder %s645_s20, %s641_s19 }
   0x7   : > { %p167_p2 = scmp.eq.s32.totalorder %s492_s24, 1  ;;  %p172_p3 = scmp.ne.s32.totalorder %s641_s19, %s637_s18 }
   0x8   : > { %s830_s26 = smov (%p32_p0, %s30_s26), 0  ;;  %p173_p5 = scmp.eq.s32.totalorder %s493_s25, 1 }
   0x9   : > { %p739_p4 = por %p167_p2, %p166_p1  ;;  %s151_s29 = ssub.s32 %s653_s22, %s830_s26 }
   0xa   : > { %p496_p6 = scmp.ge.s32.totalorder %s657_s23, 1  ;;  %p154_p7 = scmp.eq.s32.totalorder %s151_s29, 0 }
   0xb   : > { %p746_p8 = por %p173_p5, %p172_p3  ;;  %p217_p9 = scmp.lt.s32.totalorder %s657_s23, 3 }
   0xc   : > { %s752_s6 = scalar_select %p154_p7, %s645_s20, %s156_s27  }
   0xd   : > { %p218_p10 = pnand %p496_p6, %p217_p9 }
   0xe   : > { %p251_p11 = scmp.lt.s32.totalorder (!%p218_p10), %s649_s21, 1  ;;  %s662_s17 = smov (!%p218_p10), 1  }
   0xf   : > { %221 = sbr.rel (%p218_p10) target bundleno = 479 (0x1df), region = 40  ;;  %s663_s24 = smov (!%p218_p10), 16  }
  0x10   : > { %s666_s25 = smov (!%p218_p10), 127   ;;  %s667_s7 = smov (!%p218_p10), 126  }
  0x11   : > { %s503_s12 = sshll.u32 (!%p218_p10), %s649_s21, 7 }
  0x14   : > { %v262_v0 = vld [vmem:[%s818_s2] sm:$0xf]  ;;  %v659_v1 = vmov 1   ;;  %s252_s9 = scalar_select %p251_p11, %s649_s21, 1  ;;  %v660_v2 = vmov 0   ;;  %v661_v3 = vmov 2  }
  0x15   : > { %577 = vset.pattern.permute.xlu0 %v659_v1  ;;  %579 = vset.pattern.permute.xlu1 %v660_v2  ;;  %vm277_vm0 = vcmask 7168   ;;  %v664_v7 = vmov 0.0   ;;  %vm665_vm1 = vmmov 0   ;;  %vm279_vm2 = vcmask 138240   ;;  %v264_v14 = vld [vmem:[%s820_s4] sm:$0xff]  ;;  %s668_s21 = smov [#allocation2]  }
  0x16   : > { %288 = vperm.xlu0 %577, %v262_v0   ;;  %s498_s10 = sshll.u32 %s252_s9, 2  ;;  %508 = vmatprep.subr.mxu0 %v664_v7  ;;  %vm316_vm3 = vcmask 1043456   ;;  %v263_v22 = vld [vmem:[%s819_s3] sm:$0xff]  ;;  %vm312_vm4 = vcmask 31744   ;;  %vm390_vm5 = vcmask 130048   ;;  %s585_s27 = sshll.u32 %s668_s21, 4  ;;  %s586_s27 = int_to_ptr.vmem [resolvable:$false] %s585_s27 }
  0x17   : > { %s257_s13 = scalar_lea.vmem %s816_s0, %s498_s10  ;;  %s261_s16 = scalar_lea.vmem %s817_s1, %s498_s10  ;;  %510 = vmatprep.mubr.msk.f32.mxu0 %vm665_vm1, %v664_v7 }
  0x18   : > { %v268_v4 = vld [vmem:[%s257_s13] sm:$0xf]  ;;  %s248_s10 = sand.u32 1, %s641_s19   ;;  %s587_s29 = scalar_lea.vmem %s586_s27, 256 }
  0x19   : > { %270 = vrot.lane.b32.xlu1 %v268_v4, %s662_s17  ;;  %v267_v5 = vld [vmem:[%s261_s16] sm:$0xf]  ;;  %s497_s11 = sshll.u32 %s248_s10, 3  ;;  %s776_s17 = scalar_lea.hbm %s821_s5, %s503_s12 }
  0x1a   : > { %578 = vset.pattern.permute.xlu0 %v661_v3  ;;  %s250_s13 = scalar_lea.vmem [#allocation2], %s497_s11 }
  0x1b   : > { %298 = vperm.xlu0 %578, %v262_v0   ;;  %s407_s14 = sshll.u32 %s250_s13, 4  ;;  %s408_s14 = int_to_ptr.vmem [resolvable:$true] %s407_s14 }
  0x1c   : > { %p588_p1 = scmp.lt.s32.totalorder %s408_s14, %s586_s27 }
  0x1d   : > { %274 = vrot.lane.b32.xlu1 %v267_v5, %s663_s24  ;;  %s393_s24 = scalar_lea.sflag [#allocation3], %s248_s10 }
  0x1f   : > { %580 = vset.pattern.permute.xlu0 %v660_v2 }
  0x21   : > { %283 = vperm.xlu1 %579, %v262_v0  }
  0x8b   : > { %v271_v6 = vpop.permute.xlu1 %270 }
  0x8c   : > { %v278_v8 = vsel %vm277_vm0, %v267_v5, %v271_v6 }
  0x8f   : > { %v275_v10 = vpop.permute.xlu1 %274 }
  0x90   : > { %v280_v11 = vsel %vm279_vm2, %v278_v8, %v275_v10 }
  0x91   : > { %v289_v9 = vpop.permute.xlu0 %288 }
  0x92   : > { %v291_v12 = vmul.f32 %v289_v9, %v280_v11 }
  0x94   : > { %293 = vrot.lane.b32.xlu0 %v291_v12, %s666_s25  ;;  %s581_s25 = scalar_lea.vmem %s408_s14, 128 }
  0x95   : > { %p582_p12 = scmp.ne.s32.totalorder %s408_s14, %s581_s25  ;;  %p589_p2 = scmp.lt.s32.totalorder %s587_s29, %s581_s25 }
  0x96   : > { %v299_v13 = vpop.permute.xlu0 %298 }
  0x97   : > { %v301_v15 = vmul.f32 %v299_v13, %v280_v11  ;;  %p583_p13 = pnand %p582_p12, %p739_p4  ;;  %p590_p3 = por %p589_p2, %p588_p1 }
  0x98   : > { %309 = vperm.xlu0 %580, %v264_v14  }
  0x99   : > { %303 = vrot.lane.b32.xlu1 %v301_v15, %s667_s7  ;;  %p584_p0 = pneg %p583_p13 }
  0x9b   : > { %p591_p5 = pnand %p590_p3, %p584_p0 }
  0x9c   : > { %v284_v16 = vpop.permute.xlu1 %283 }
  0x9d   : > { %v286_v18 = vmul.f32 %v284_v16, %v280_v11 }
 0x106   : > { %v294_v17 = vpop.permute.xlu0 %293 }
 0x107   : > { %v296_v19 = vadd.f32 %v294_v17, %v286_v18 }
 0x10b   : > { %v304_v20 = vpop.permute.xlu1 %303 }
 0x10c   : > { %v306_v21 = vadd.f32 %v304_v20, %v296_v19 }
 0x10e   : > { %509 = vmatpush3.msk.msra.mxu0 %vm316_vm3, %v306_v21 }
 0x10f   : > { %511 = vmatmul.mubr.msk.f32.vlgmr.msra.gmra.mxu0 %vm312_vm4, %v263_v22 }
 0x113   : > { %v310_v23 = vpop.permute.xlu0 %309 }
 0x1cf   : > { %v386_v24 = vpop.f32.mrf.mxu0 }
 0x1d0   : > { %v387_v25 = vadd.f32 %v386_v24, %v310_v23 }
 0x1d1   : > { %v512_v26 = vpop.f32.mrf.mxu0 }
 0x1d2   : > { %391 = vst.msk [vmem:[%s250_s13] sm:$0xff] %vm390_vm5, %v387_v25 }
 0x1d3   : > { %594 = shalt.err (!%p591_p5)
}
 0x1d4   : > { %s595_s7 = scalar_lea.hbm %s776_s17, 128  ;;  %s599_s10 = scalar_lea.hbm %s821_s5, 256 }
 0x1d5   : > { %p596_p6 = scmp.ne.s32.totalorder %s776_s17, %s595_s7  ;;  %p600_p10 = scmp.lt.s32.totalorder %s776_s17, %s821_s5 }
 0x1d6   : > { %p601_p11 = scmp.lt.s32.totalorder %s599_s10, %s595_s7 }
 0x1d7   : > { %p597_p7 = pnand %p596_p6, %p739_p4 }
 0x1d8   : > { %p602_p12 = por %p601_p11, %p600_p10 }
 0x1d9   : > { %p598_p9 = pneg %p597_p7 }
 0x1db   : > { %p603_p13 = pnand %p602_p12, %p598_p9 }
 0x1dd   : > { %606 = shalt.err (!%p603_p13)
}
 0x1de   : > { %513 = dma.vmem_to_hbm [thread:$0]  (%p739_p4), %s408_s14, 128, %s776_s17, %s393_s24  }
 0x1df PF: > { %p519_p0 = scmp.ge.s32.totalorder %s657_s23, 2  ;;  %s419_s13 = sand.u32 1, %s637_s18  }
 0x1e0   : > { %s420_s15 = scalar_lea.sflag [#allocation3], %s419_s13 }
 0x1e1   : > { %p516_p1 = pnand %p519_p0, %p746_p8 }
 0x1e3   : > { %p517_p2 = pneg %p516_p1 }
 0x1e5   : > { %632 = dma.done.wait (%p517_p2), %s420_s15, 128  }
 0x1e6   : > { %634 = vsyncadd (%p517_p2), %s420_s15, 4294967168  ;;  %s18_s23 = sadd.s32 1, %s657_s23   ;;  %s824_s18 = smov %s641_s19 }
 0x1e7   : > { %p15_p3 = scmp.ge.s32.totalorder %s18_s23, 4   ;;  %s825_s19 = smov %s645_s20 }
 0x1e8   : > { %s826_s20 = smov %s752_s6  ;;  %s827_s21 = smov %s653_s22 }
 0x1e9   : > { %s828_s22 = smov %s830_s26  ;;  %17 = sbr.rel (!%p15_p3) target bundleno = 4 (0x4), region = 79 }
 0x1ee   :  { %425 = vsyncpa [#allocation3], 1 }
 0x1ef   :  { %427 = vsyncpa [#allocation3 + $0x1], 1 }

</bundles_post_ra>
